<compile_context>
chip_gen: v7x
topology: tpu7x:2x2x1
jax: 0.10.0
libtpu: 0.0.40
codegen_flags: <defaults>
</compile_context>

<pallas_src>
import functools

import jax
import jax.numpy as jnp
import numpy as np
from jax.experimental import pallas as pl
from jax.experimental.pallas import tpu as pltpu


def create_expanded_neighbor_list(neighbor_list, in_channels_per_joint):
    expanded_neighbor_list = []
    for neighbor in neighbor_list:
        expanded = []
        for k in neighbor:
            for i in range(in_channels_per_joint):
                expanded.append(k * in_channels_per_joint + i)
        expanded_neighbor_list.append(expanded)
    return expanded_neighbor_list


def build_mask(neighbor_list, in_cpj, out_cpj, joint_num, kernel_size):
    """0/1 connectivity mask, same construction as SkeletonConv.reset_parameters."""
    expanded = create_expanded_neighbor_list(neighbor_list, in_cpj)
    mask = np.zeros((out_cpj * joint_num, in_cpj * joint_num, kernel_size), np.float32)
    for i, nb in enumerate(expanded):
        mask[out_cpj * i:out_cpj * (i + 1), nb, :] = 1.0
    return jnp.asarray(mask)


def _round_up(n, m):
    return ((n + m - 1) // m) * m


def _skel_conv_kernel(w_ref, b_ref, x_ref, o_ref, *, K, TILE_T, NT):
    # w_ref : (K, C_out, C_in)   bf16, resident masked weight, one slice per tap
    # b_ref : (C_out, 1)         f32,  resident bias
    # x_ref : (C_in, T_buf)      bf16, reflect-padded input for this batch
    # o_ref : (C_out, NT*TILE_T) dense (stride-1) conv output for this batch
    bias = b_ref[...]
    w = [w_ref[k] for k in range(K)]          # hoist resident weight loads
    for j in range(NT):                       # static unroll -> static lane slices
        t0 = j * TILE_T
        acc = jnp.zeros((o_ref.shape[0], TILE_T), jnp.float32)
        for k in range(K):
            acc += jnp.dot(w[k], x_ref[:, t0 + k: t0 + k + TILE_T],
                           preferred_element_type=jnp.float32)
        o_ref[:, t0:t0 + TILE_T] = (acc + bias).astype(o_ref.dtype)


def skeleton_conv(weight, mask, bias, x, *, stride, padding):
    """Pallas SkeletonConv forward. weight/mask: (C_out, C_in, K), bias: (C_out,),
    x: (B, C_in, T) -> (B, C_out, T_out)."""
    C_out, C_in, K = weight.shape
    B, C_in_x, T = x.shape
    assert C_in_x == C_in

    # Masked weight (what forward() uses), per-tap layout, bf16 for the MXU.
    w_taps = jnp.transpose(weight * mask, (2, 0, 1)).astype(jnp.bfloat16)  # (K,C_out,C_in)
    b2 = bias.reshape(C_out, 1).astype(jnp.float32)

    # Reflect padding along time (matches torch F.pad mode='reflect').
    x_bf = x.astype(jnp.bfloat16)
    if padding > 0:
        x_pad = jnp.pad(x_bf, ((0, 0), (0, 0), (padding, padding)), mode="reflect")
    else:
        x_pad = x_bf
    T_padded = T + 2 * padding
    T_dense = T_padded - K + 1                 # dense (stride-1) output length
    T_out = (T_padded - K) // stride + 1       # requested output length

    # Time tiling: 128-lane-aligned tiles of up to 2048 lanes, zero-waste rounding.
    LANE = 128
    n_min = _round_up(T_dense, LANE)
    n_tiles = pl.cdiv(n_min, 2048)
    TILE_T = _round_up(pl.cdiv(n_min, n_tiles), LANE)
    NT = pl.cdiv(n_min, TILE_T)
    T_out_pad = NT * TILE_T
    T_buf = T_out_pad + K - 1                  # last tap of last tile reads up to here
    if T_buf > T_padded:
        x_pad = jnp.pad(x_pad, ((0, 0), (0, 0), (0, T_buf - T_padded)))

    kernel = functools.partial(_skel_conv_kernel, K=K, TILE_T=TILE_T, NT=NT)

    out_itemsize = jnp.dtype(x.dtype).itemsize
    flops = 2 * B * C_out * C_in * K * T_out_pad
    bytes_accessed = (B * C_in * T_buf * 2          # x (bf16)
                      + K * C_out * C_in * 2        # weight (bf16)
                      + C_out * 4                   # bias (f32)
                      + B * C_out * T_out_pad * out_itemsize)

    out_dense = pl.pallas_call(
        kernel,
        out_shape=jax.ShapeDtypeStruct((B, C_out, T_out_pad), x.dtype),
        grid_spec=pltpu.PrefetchScalarGridSpec(
            num_scalar_prefetch=0,
            grid=(B,),
            in_specs=[
                pl.BlockSpec((K, C_out, C_in), lambda b: (0, 0, 0)),     # weight, resident
                pl.BlockSpec((C_out, 1), lambda b: (0, 0)),              # bias, resident
                pl.BlockSpec((None, C_in, T_buf), lambda b: (b, 0, 0)),  # x of batch b
            ],
            out_specs=pl.BlockSpec((None, C_out, T_out_pad), lambda b: (b, 0, 0)),
        ),
        compiler_params=pltpu.CompilerParams(
            dimension_semantics=("parallel",),       # v7x: batches split over 2 TCs
            vmem_limit_bytes=32 * 1024 * 1024,       # explicit budget, safe on v5e/v6e/v7x
        ),
        cost_estimate=pl.CostEstimate(flops=flops, transcendentals=0,
                                      bytes_accessed=bytes_accessed),
    )(w_taps, b2, x_pad)

    out = out_dense[:, :, :T_dense]
    if stride > 1:
        # TODO(synk): fuse the strided tap read into the kernel instead of
        # computing the dense (stride-1) output and subsampling it here.
        out = out[:, :, ::stride]
    return out[:, :, :T_out]


if __name__ == "__main__":
    # Small chain skeleton: 4 joints, each neighborhood = itself +/- 1.
    neighbor_list = [[0, 1], [0, 1, 2], [1, 2, 3], [2, 3]]
    joint_num = len(neighbor_list)
    in_cpj, out_cpj = 4, 8
    kernel_size, stride, padding = 3, 1, 1

    C_in = in_cpj * joint_num      # 16
    C_out = out_cpj * joint_num    # 32
    B, T = 2, 2560                 # grid=(2,): one batch per TC on v7x;
                                   # T_out=2560 -> two 1280-lane time tiles per batch

    key = jax.random.PRNGKey(0)
    kw, kb, kx = jax.random.split(key, 3)

    # Deterministic parameters; forward multiplies by the mask, as in PyTorch.
    weight = jax.random.uniform(kw, (C_out, C_in, kernel_size), jnp.float32, -0.5, 0.5)
    bias = jax.random.uniform(kb, (C_out,), jnp.float32, -0.1, 0.1)
    mask = build_mask(neighbor_list, in_cpj, out_cpj, joint_num, kernel_size)
    x = jax.random.normal(kx, (B, C_in, T), jnp.float32)

    # Snap weight/x to the bf16 grid so the in-kernel bf16 MXU feed is exact and
    # the f32 XLA reference agrees up to f32 accumulation-order differences.
    snap = lambda a: a.astype(jnp.bfloat16).astype(jnp.float32)
    weight, x = snap(weight), snap(x)

    out = skeleton_conv(weight, mask, bias, x, stride=stride, padding=padding)
    out = jax.block_until_ready(out)

    # Reference: reflect-pad + conv1d + bias, exactly the PyTorch forward.
    x_pad = jnp.pad(x, ((0, 0), (0, 0), (padding, padding)), mode="reflect")
    ref = jax.lax.conv_general_dilated(
        x_pad, weight * mask, window_strides=(stride,), padding="VALID",
        dimension_numbers=("NCH", "OIH", "NCH"),
    ) + bias[None, :, None]

    T_out = (T + 2 * padding - kernel_size) // stride + 1
    assert out.shape == (B, C_out, T_out), out.shape
    assert jnp.allclose(out, ref, atol=1e-3, rtol=1e-3), float(jnp.max(jnp.abs(out - ref)))

    print("KERNEL_OK")
</pallas_src>

<mosaic_0001>
module attributes {stable_mosaic.version = 11 : i64} {
  func.func @_skel_conv_kernel(%arg0: i32, %arg1: memref<3x32x16xbf16, #tpu.memory_space<vmem>>, %arg2: memref<32x1xf32, #tpu.memory_space<vmem>>, %arg3: memref<1x16x2562xbf16, #tpu.memory_space<vmem>>, %arg4: memref<1x32x2560xf32, #tpu.memory_space<vmem>>) attributes {dimension_semantics = [#tpu.dimension_semantics<parallel>], iteration_bounds = array<i64: 2>, scalar_prefetch = 0 : i64, scratch_operands = 0 : i64, tpu.core_type = #tpu.core_type<tc>, window_params = [{pipeline_mode = #tpu.pipeline_mode<synchronous>, transform_indices = @transform_0, window_bounds = array<i64: 3, 32, 16>}, {pipeline_mode = #tpu.pipeline_mode<synchronous>, transform_indices = @transform_1, window_bounds = array<i64: 32, 1>}, {transform_indices = @transform_2, window_bounds = array<i64: 1, 16, 2562>}, {transform_indices = @transform_3, window_bounds = array<i64: 1, 32, 2560>}]} {
    %c0 = arith.constant 0 : index
    %c0_0 = arith.constant 0 : index
    %0 = vector.load %arg2[%c0, %c0_0] : memref<32x1xf32, #tpu.memory_space<vmem>>, vector<32x1xf32>
    %c0_1 = arith.constant 0 : index
    %c0_2 = arith.constant 0 : index
    %c0_3 = arith.constant 0 : index
    %1 = vector.load %arg1[%c0_1, %c0_2, %c0_3] : memref<3x32x16xbf16, #tpu.memory_space<vmem>>, vector<1x32x16xbf16>
    %2 = vector.shape_cast %1 : vector<1x32x16xbf16> to vector<32x16xbf16>
    %c1 = arith.constant 1 : index
    %c0_4 = arith.constant 0 : index
    %c0_5 = arith.constant 0 : index
    %3 = vector.load %arg1[%c1, %c0_4, %c0_5] : memref<3x32x16xbf16, #tpu.memory_space<vmem>>, vector<1x32x16xbf16>
    %4 = vector.shape_cast %3 : vector<1x32x16xbf16> to vector<32x16xbf16>
    %c2 = arith.constant 2 : index
    %c0_6 = arith.constant 0 : index
    %c0_7 = arith.constant 0 : index
    %5 = vector.load %arg1[%c2, %c0_6, %c0_7] : memref<3x32x16xbf16, #tpu.memory_space<vmem>>, vector<1x32x16xbf16>
    %6 = vector.shape_cast %5 : vector<1x32x16xbf16> to vector<32x16xbf16>
    %cst = arith.constant 0.000000e+00 : f32
    %7 = vector.broadcast %cst : f32 to vector<32x1280xf32>
    %c0_8 = arith.constant 0 : index
    %c0_9 = arith.constant 0 : index
    %c0_10 = arith.constant 0 : index
    %8 = vector.load %arg3[%c0_8, %c0_9, %c0_10] : memref<1x16x2562xbf16, #tpu.memory_space<vmem>>, vector<1x16x1280xbf16>
    %9 = vector.shape_cast %8 : vector<1x16x1280xbf16> to vector<16x1280xbf16>
    %cst_11 = arith.constant dense<0.000000e+00> : vector<32x1280xf32>
    %10 = tpu.matmul %2, %9, %cst_11 {dimension_numbers = #tpu.dot_dimension_numbers<[1], [0], [0], [1], [0, 0, 1, 1], [], []>} : vector<32x16xbf16>, vector<16x1280xbf16>, vector<32x1280xf32> -> vector<32x1280xf32>
    %11 = arith.addf %7, %10 : vector<32x1280xf32>
    %c0_12 = arith.constant 0 : index
    %c0_13 = arith.constant 0 : index
    %c1_14 = arith.constant 1 : index
    %12 = vector.load %arg3[%c0_12, %c0_13, %c1_14] : memref<1x16x2562xbf16, #tpu.memory_space<vmem>>, vector<1x16x1280xbf16>
    %13 = vector.shape_cast %12 : vector<1x16x1280xbf16> to vector<16x1280xbf16>
    %cst_15 = arith.constant dense<0.000000e+00> : vector<32x1280xf32>
    %14 = tpu.matmul %4, %13, %cst_15 {dimension_numbers = #tpu.dot_dimension_numbers<[1], [0], [0], [1], [0, 0, 1, 1], [], []>} : vector<32x16xbf16>, vector<16x1280xbf16>, vector<32x1280xf32> -> vector<32x1280xf32>
    %15 = arith.addf %11, %14 : vector<32x1280xf32>
    %c0_16 = arith.constant 0 : index
    %c0_17 = arith.constant 0 : index
    %c2_18 = arith.constant 2 : index
    %16 = vector.load %arg3[%c0_16, %c0_17, %c2_18] : memref<1x16x2562xbf16, #tpu.memory_space<vmem>>, vector<1x16x1280xbf16>
    %17 = vector.shape_cast %16 : vector<1x16x1280xbf16> to vector<16x1280xbf16>
    %cst_19 = arith.constant dense<0.000000e+00> : vector<32x1280xf32>
    %18 = tpu.matmul %6, %17, %cst_19 {dimension_numbers = #tpu.dot_dimension_numbers<[1], [0], [0], [1], [0, 0, 1, 1], [], []>} : vector<32x16xbf16>, vector<16x1280xbf16>, vector<32x1280xf32> -> vector<32x1280xf32>
    %19 = arith.addf %15, %18 : vector<32x1280xf32>
    %20 = vector.broadcast %0 : vector<32x1xf32> to vector<32x1280xf32>
    %21 = arith.addf %19, %20 : vector<32x1280xf32>
    %c0_20 = arith.constant 0 : index
    %c0_21 = arith.constant 0 : index
    %c0_22 = arith.constant 0 : index
    %22 = vector.load %arg4[%c0_20, %c0_21, %c0_22] : memref<1x32x2560xf32, #tpu.memory_space<vmem>>, vector<1x32x1280xf32>
    %23 = vector.shape_cast %22 : vector<1x32x1280xf32> to vector<32x1280xf32>
    %24 = vector.shape_cast %21 : vector<32x1280xf32> to vector<1x32x1280xf32>
    tpu.vector_store %arg4[%c0_20, %c0_21, %c0_22], %24 {strides = array<i32>} : memref<1x32x2560xf32, #tpu.memory_space<vmem>>, vector<1x32x1280xf32>,
    %cst_23 = arith.constant 0.000000e+00 : f32
    %25 = vector.broadcast %cst_23 : f32 to vector<32x1280xf32>
    %c0_24 = arith.constant 0 : index
    %c0_25 = arith.constant 0 : index
    %c1280 = arith.constant 1280 : index
    %26 = vector.load %arg3[%c0_24, %c0_25, %c1280] : memref<1x16x2562xbf16, #tpu.memory_space<vmem>>, vector<1x16x1280xbf16>
    %27 = vector.shape_cast %26 : vector<1x16x1280xbf16> to vector<16x1280xbf16>
    %cst_26 = arith.constant dense<0.000000e+00> : vector<32x1280xf32>
    %28 = tpu.matmul %2, %27, %cst_26 {dimension_numbers = #tpu.dot_dimension_numbers<[1], [0], [0], [1], [0, 0, 1, 1], [], []>} : vector<32x16xbf16>, vector<16x1280xbf16>, vector<32x1280xf32> -> vector<32x1280xf32>
    %29 = arith.addf %25, %28 : vector<32x1280xf32>
    %c0_27 = arith.constant 0 : index
    %c0_28 = arith.constant 0 : index
    %c1281 = arith.constant 1281 : index
    %30 = vector.load %arg3[%c0_27, %c0_28, %c1281] : memref<1x16x2562xbf16, #tpu.memory_space<vmem>>, vector<1x16x1280xbf16>
    %31 = vector.shape_cast %30 : vector<1x16x1280xbf16> to vector<16x1280xbf16>
    %cst_29 = arith.constant dense<0.000000e+00> : vector<32x1280xf32>
    %32 = tpu.matmul %4, %31, %cst_29 {dimension_numbers = #tpu.dot_dimension_numbers<[1], [0], [0], [1], [0, 0, 1, 1], [], []>} : vector<32x16xbf16>, vector<16x1280xbf16>, vector<32x1280xf32> -> vector<32x1280xf32>
    %33 = arith.addf %29, %32 : vector<32x1280xf32>
    %c0_30 = arith.constant 0 : index
    %c0_31 = arith.constant 0 : index
    %c1282 = arith.constant 1282 : index
    %34 = vector.load %arg3[%c0_30, %c0_31, %c1282] : memref<1x16x2562xbf16, #tpu.memory_space<vmem>>, vector<1x16x1280xbf16>
    %35 = vector.shape_cast %34 : vector<1x16x1280xbf16> to vector<16x1280xbf16>
    %cst_32 = arith.constant dense<0.000000e+00> : vector<32x1280xf32>
    %36 = tpu.matmul %6, %35, %cst_32 {dimension_numbers = #tpu.dot_dimension_numbers<[1], [0], [0], [1], [0, 0, 1, 1], [], []>} : vector<32x16xbf16>, vector<16x1280xbf16>, vector<32x1280xf32> -> vector<32x1280xf32>
    %37 = arith.addf %33, %36 : vector<32x1280xf32>
    %38 = vector.broadcast %0 : vector<32x1xf32> to vector<32x1280xf32>
    %39 = arith.addf %37, %38 : vector<32x1280xf32>
    %c0_33 = arith.constant 0 : index
    %c0_34 = arith.constant 0 : index
    %c1280_35 = arith.constant 1280 : index
    %40 = vector.load %arg4[%c0_33, %c0_34, %c1280_35] : memref<1x32x2560xf32, #tpu.memory_space<vmem>>, vector<1x32x1280xf32>
    %41 = vector.shape_cast %40 : vector<1x32x1280xf32> to vector<32x1280xf32>
    %42 = vector.shape_cast %39 : vector<32x1280xf32> to vector<1x32x1280xf32>
    tpu.vector_store %arg4[%c0_33, %c0_34, %c1280_35], %42 {strides = array<i32>} : memref<1x32x2560xf32, #tpu.memory_space<vmem>>, vector<1x32x1280xf32>,
    return
  }
  func.func @transform_0(%arg0: i32) -> (i32, i32, i32) {
    %c0_i32 = arith.constant 0 : i32
    %c0_i32_0 = arith.constant 0 : i32
    %c0_i32_1 = arith.constant 0 : i32
    %c0_i32_2 = arith.constant 0 : i32
    return %c0_i32, %c0_i32_0, %c0_i32_1 : i32, i32, i32
  }
  func.func @transform_1(%arg0: i32) -> (i32, i32) {
    %c0_i32 = arith.constant 0 : i32
    %c0_i32_0 = arith.constant 0 : i32
    %c0_i32_1 = arith.constant 0 : i32
    return %c0_i32, %c0_i32_0 : i32, i32
  }
  func.func @transform_2(%arg0: i32) -> (i32, i32, i32) {
    %c0_i32 = arith.constant 0 : i32
    %c0_i32_0 = arith.constant 0 : i32
    %c0_i32_1 = arith.constant 0 : i32
    return %arg0, %c0_i32, %c0_i32_0 : i32, i32, i32
  }
  func.func @transform_3(%arg0: i32) -> (i32, i32, i32) {
    %c0_i32 = arith.constant 0 : i32
    %c0_i32_0 = arith.constant 0 : i32
    %c0_i32_1 = arith.constant 0 : i32
    return %arg0, %c0_i32, %c0_i32_0 : i32, i32, i32
  }
}

</mosaic_0001>

<bundles_post_ra>
// kernel: tpu_custom_call.1
= control target key start
LH: loop header
LB: loop body
LE: loop exit
PB: predicated region body
PF: predicated region fallthrough
CT: control target
= control target key end

     0   :  { %8 = vsyncpa [#allocation3], 0  ;;  %s3776_s0 = inlined_call_operand.vmem [shape: bf16[3,32,16], index: 0, kind: input, shape index: {}]   ;;  %s3777_s1 = inlined_call_operand.vmem [shape: f32[32,1], index: 1, kind: input, shape index: {}]   ;;  %s3778_s2 = inlined_call_operand.hbm [shape: bf16[2,16,2562], index: 2, kind: input, shape index: {}]   ;;  %s3779_s3 = inlined_call_operand.hbm [shape: f32[2,32,2560], index: 3, kind: output, shape index: {}]  }
   0x1   :  { %10 = vsyncpa [#allocation3 + $0x1], 0 }
   0x2   :  { %11 = vsyncpa [#allocation4], 0 }
   0x3   :  { %13 = vsyncpa [#allocation4 + $0x1], 0  ;;  %s2987_s12 = smov 0   ;;  %s2989_s13 = smov 0  }
   0x4   :  { %s2991_s14 = smov 0   ;;  %s2993_s15 = smov 0  }
   0x5 LB: > { %s3008_s16 = sadd.s32 4294967295, %s2956_s15   ;;  %s2498_s17 = sadd.s32 4294967294, %s2956_s15   ;;  %s2956_s15 = sphi %s2993_s15, %s3791_s15   ;;  %s2952_s14 = sphi %s2991_s14, %s3790_s14   ;;  %s2948_s13 = sphi %s2989_s13, %s3789_s13   ;;  %s2944_s12 = sphi %s2987_s12, %s3788_s12  }
   0x6   : > { %s3012_s18 = sadd.s32 1, %s2956_s15   ;;  %s68_s19 = sadd.s32 1, %s2952_s14 }
   0x7   : > { %s65_s20 = ssub.s32 %s2956_s15, %s3012_s18  ;;  %p75_p0 = scmp.ne.s32.totalorder %s2952_s14, %s2948_s13 }
   0x8   : > { %p66_p1 = scmp.eq.s32.totalorder %s65_s20, 0  ;;  %p76_p2 = scmp.eq.s32.totalorder %s2956_s15, 0 }
   0x9   : > { %p81_p3 = scmp.ne.s32.totalorder %s2948_s13, %s2944_s12  ;;  %p82_p4 = scmp.eq.s32.totalorder %s3008_s16, 0 }
   0xa   : > { %s3024_s21 = scalar_select %p66_p1, %s2952_s14, %s68_s19  }
   0xb   : > { %p77_p5 = por %p76_p2, %p75_p0  ;;  %p3026_p6 = por %p82_p4, %p81_p3 }
   0xc   : > { %p105_p7 = scmp.eq.s32.totalorder %s3008_s16, 1  ;;  %p111_p8 = scmp.eq.s32.totalorder %s2498_s17, 1 }
   0xd   : > { %p2779_p10 = scmp.lt.s32.totalorder %s2956_s15, 2  ;;  %s137_s25 = sand.u32 1, %s2952_s14  }
   0xe   : > { %p3033_p11 = por %p105_p7, %p75_p0  ;;  %p3037_p12 = por %p111_p8, %p81_p3 }
   0xf   : > { %s2763_s26 = smul.u32 2688, %s2956_s15  ;;  %p3048_p13 = pnand %p2779_p10, %p77_p5 }
  0x10   : > { %s3782_s23 = scalar_select %p3033_p11, 1, 0 }
  0x11   : > { %s3783_s24 = scalar_select %p3037_p12, 1, 0 }
  0x12   : > { %s2762_s27 = smul.u32 168, %s137_s25  ;;  %s3046_s30 = scalar_lea.hbm %s3778_s2, %s2763_s26 }
  0x13   : > { %s3054_s7 = scalar_lea.sflag [#allocation3], %s137_s25  ;;  %s2860_s8 = scalar_lea.hbm %s3046_s30, 2688 }
  0x14   : > { %s141_s5 = scalar_lea.vmem [#allocation2], %s2762_s27  ;;  %p2861_p0 = scmp.ne.s32.totalorder %s3046_s30, %s2860_s8 }
  0x15   : > { %s148_s6 = sshll.u32 %s141_s5, 4  ;;  %p2862_p1 = pneg %p3048_p13  ;;  %s3052_s6 = int_to_ptr.vmem [resolvable:$true] %s148_s6 }
  0x16   : > { %s2865_s11 = scalar_lea.hbm %s3778_s2, 5376  ;;  %p2866_p4 = scmp.lt.u32.totalorder %s3046_s30, %s3778_s2 }
  0x17   : > { %p2863_p2 = pnand %p2862_p1, %p2861_p0  ;;  %p2867_p5 = scmp.lt.u32.totalorder %s2865_s11, %s2860_s8 }
  0x18   : > { %p2869_p8 = scmp.lt.u32.totalorder %s2860_s8, %s3046_s30 }
  0x19   : > { %p2864_p3 = pneg %p2863_p2  ;;  %p2868_p7 = por %p2867_p5, %p2866_p4 }
  0x1b   : > { %p2870_p10 = por %p2869_p8, %p2868_p7 }
  0x1d   : > { %p2871_p9 = pnand %p2870_p10, %p2864_p3 }
  0x1f   : > { %2874 = shalt.err (!%p2871_p9)
}
  0x20   : > { %s2875_s20 = scalar_lea.vmem %s3052_s6, 2688  ;;  %s2958_s25 = smov [#allocation2]  }
  0x21   : > { %p2876_p0 = scmp.ne.s32.totalorder %s3052_s6, %s2875_s20  ;;  %s2880_s26 = sshll.u32 %s2958_s25, 4  ;;  %s2881_s26 = int_to_ptr.vmem [resolvable:$false] %s2880_s26 }
  0x22   : > { %s2882_s27 = scalar_lea.vmem %s2881_s26, 5376  ;;  %p2883_p11 = scmp.lt.s32.totalorder %s3052_s6, %s2881_s26 }
  0x23   : > { %p2878_p2 = pnand %p2876_p0, %p2862_p1  ;;  %p2884_p4 = scmp.lt.s32.totalorder %s2882_s27, %s2875_s20 }
  0x25   : > { %p2879_p12 = pneg %p2878_p2  ;;  %p2885_p5 = por %p2884_p4, %p2883_p11 }
  0x27   : > { %p2886_p7 = pnand %p2885_p5, %p2879_p12 }
  0x29   : > { %2889 = shalt.err (!%p2886_p7)
}
  0x2a   : > { %s2959_s28 = smov 1344   ;;  %s2960_s29 = smov 84  }
  0x2b   : > { %2774 = dma.hbm_to_vmem [thread:$0]  (!%p3048_p13), %s3046_s30, 2688, %s3052_s6, %s3054_s7, %s2959_s28, %s2959_s28, %s2960_s29  }
  0x2c   : > { %p2502_p9 = scmp.ge.s32.totalorder %s2956_s15, 1  ;;  %p156_p1 = scmp.lt.s32.totalorder %s2956_s15, 3 }
  0x2e   : > { %p157_p3 = pnand %p2502_p9, %p156_p1 }
  0x2f   : > { %s3085_s5 = sand.u32 (!%p157_p3), 1, %s2948_s13  }
  0x30   : > { %160 = sbr.rel (%p157_p3) target bundleno = 647 (0x287), region = 32  ;;  %s163_s9 = scalar_lea.sflag (!%p157_p3), [#allocation3], %s3085_s5 }
  0x31   : > { %s2764_s8 = smul.u32 (!%p157_p3), 168, %s3085_s5 }
  0x33   : > { %s3089_s10 = scalar_lea.vmem (!%p157_p3), [#allocation2], %s2764_s8 }
  0x37   : > { %2935 = dma.done.wait (%p3026_p6), %s163_s9, 2688  }
  0x38   : > { %2937 = vsyncadd (%p3026_p6), %s163_s9, 4294964608  ;;  %v2961_v0 = vmov 0   ;;  %v3100_v1 = vld [vmem:[%s3089_s10 + $0x4] ss:$84 sps:$4 sm:$0xff]   ;;  %v3103_v2 = vld [vmem:[%s3089_s10] ss:$84 sps:$4 sm:$0xff]  }
  0x39   : > { %807 = vmatprep.mubr.bf16.mxu1 %v2961_v0  ;;  %357 = vmatprep.mubr.bf16.mxu0 %v2961_v0  ;;  %s2962_s22 = smov 127   ;;  %v3108_v3 = vld [vmem:[%s3089_s10 + $0x8] ss:$84 sps:$4 sm:$0xff]   ;;  %v3113_v4 = vld [vmem:[%s3089_s10 + $0xc] ss:$84 sps:$4 sm:$0xff]   ;;  %s2963_s30 = smov 126  }
  0x3a   : > { %2820 = vset.pattern.permute.xlu0 %v2961_v0  ;;  %2821 = vset.pattern.permute.xlu1 %v2961_v0  ;;  %v3116_v5 = vld [vmem:[%s3089_s10 + $0x10] ss:$84 sps:$4 sm:$0xff]   ;;  %v2831_v7 = vld [vmem:[%s3089_s10 + $0x18] ss:$84 sps:$4 sm:$0xff]   ;;  %v3131_v8 = vld [vmem:[%s3089_s10 + $0x14] ss:$84 sps:$4 sm:$0xff]  }
  0x3b   : > { %277 = vrot.lane.b32.xlu0 %v3100_v1, %s2962_s22  ;;  %275 = vrot.lane.b32.xlu1 %v3103_v2, %s2962_s22  ;;  %v2833_v6 = vld [vmem:[%s3089_s10 + $0x1c] ss:$84 sps:$4 sm:$0xff]   ;;  %vm318_vm0 = vcmask 130048   ;;  %v3146_v10 = vld [vmem:[%s3089_s10 + $0x20] ss:$84 sps:$4 sm:$0xff]   ;;  %vm297_vm1 = vcmask 1039360  }
  0x3c   : > { %775 = vmatprep.subr.bf16.mxu1 %v2833_v6  ;;  %v3138_v9 = vld [vmem:[%s3776_s0] sm:$0xff]   ;;  %v3153_v11 = vld [vmem:[%s3776_s0 + $0x8] sm:$0xff]   ;;  %v3258_v31 = vld [vmem:[%s3776_s0 + $0x10] sm:$0xff]   ;;  %vm913_vm2 = vcmask 1031168   ;;  %s2765_s11 = smul.u32 640, %s3085_s5  ;;  %p3785_p11 = scmp.ne.s32.totalorder %s3782_s23, 0 }
  0x3d   : > { %776 = vmatpush1.bf16.msra.mxu1 %v2831_v7  ;;  %v3162_v12 = vld [vmem:[%s3089_s10 + $0x2c] ss:$84 sps:$4 sm:$0xff]   ;;  %v3168_v13 = vld [vmem:[%s3089_s10 + $0x30] ss:$84 sps:$4 sm:$0xff]   ;;  %v3173_v14 = vld [vmem:[%s3089_s10 + $0x28] ss:$84 sps:$4 sm:$0xff]  }
  0x3e   : > { %v3178_v15 = vld [vmem:[%s3089_s10 + $0x24] ss:$84 sps:$4 sm:$0xff]   ;;  %v2842_v16 = vld [vmem:[%s3089_s10 + $0x28] ss:$84 sps:$4 sm:$0xff]   ;;  %v3200_v20 = vld [vmem:[%s3089_s10 + $0x40] ss:$84 sps:$4 sm:$0xff]  }
  0x3f   : > { %279 = vrot.lane.b32.xlu0 %v3108_v3, %s2962_s22  ;;  %281 = vrot.lane.b32.xlu1 %v3113_v4, %s2962_s22  ;;  %v3186_v17 = vld [vmem:[%s3089_s10 + $0x34] ss:$84 sps:$4 sm:$0xff]   ;;  %v3190_v18 = vld [vmem:[%s3089_s10 + $0x38] ss:$84 sps:$4 sm:$0xff]   ;;  %s3556_s17 = scalar_lea.vmem [#allocation5], %s2765_s11  ;;  %s2766_s19 = smul.u32 10240, %s3008_s16 }
  0x40   : > { %2542 = vmatmul.mubr.msk.bf16.vlgmr.msra.gmra.mrb[0].mxu1 %vm318_vm0, %v3138_v9  ;;  %v3195_v19 = vld [vmem:[%s3089_s10 + $0x3c] ss:$84 sps:$4 sm:$0xff]   ;;  %v3205_v21 = vld [vmem:[%s3089_s10 + $0x4c] ss:$84 sps:$4 sm:$0xff]   ;;  %v3232_v24 = vld [vmem:[%s3089_s10 + $0x44] ss:$84 sps:$4 sm:$0xff]  }
  0x41   : > { %817 = vmatprep.mubr.bf16.mxu1 %v2961_v0  ;;  %v2851_v22 = vld [vmem:[%s3089_s10 + $0x50] ss:$84 sps:$4 sm:$0xff]   ;;  %v3213_v23 = vld [vmem:[%s3089_s10 + $0x48] ss:$84 sps:$4 sm:$0xff]   ;;  %s2425_s20 = sshll.u32 %s3556_s17, 4  ;;  %s3726_s27 = scalar_lea.hbm %s3779_s3, %s2766_s19  ;;  %s3728_s20 = int_to_ptr.vmem [resolvable:$true] %s2425_s20 }
  0x42   : > { %v190_v37 = vld [vmem:[%s3777_s1] sm:$0xff]  ;;  %v3279_v41 = vld [vmem:[%s3776_s0 + $0x18] sm:$0xff]   ;;  %v191_v46 = vld [vmem:[%s3777_s1 + $0x8] sm:$0xff]  ;;  %s2412_s16 = scalar_lea.sflag [#allocation4], %s3085_s5  ;;  %s2890_s28 = scalar_lea.vmem %s3728_s20, 10240 }
  0x43   : > { %283 = vrot.lane.b32.xlu0 %v3116_v5, %s2962_s22  ;;  %897 = vrot.lane.b32.xlu1 %v3113_v4, %s2963_s30  ;;  %v3284_v42 = vld [vmem:[%s3776_s0 + $0x20] sm:$0xff]   ;;  %v192_v49 = vld [vmem:[%s3777_s1 + $0x10] sm:$0xff]  ;;  %p2891_p6 = scmp.ne.s32.totalorder %s3728_s20, %s2890_s28  ;;  %s2964_s29 = smov [#allocation5]  }
  0x44   : > { %v3304_v50 = vld [vmem:[%s3776_s0 + $0x28] sm:$0xff]   ;;  %v193_v56 = vld [vmem:[%s3777_s1 + $0x18] sm:$0xff]  ;;  %s2894_s8 = sshll.u32 %s2964_s29, 4  ;;  %s2895_s8 = int_to_ptr.vmem [resolvable:$false] %s2894_s8 }
  0x45   : > { %p2892_p12 = pnand %p2891_p6, %p3785_p11  ;;  %s2896_s9 = scalar_lea.vmem %s2895_s8, 20480 }
  0x46   : > { %p2897_p8 = scmp.lt.s32.totalorder %s3728_s20, %s2895_s8  ;;  %p2898_p10 = scmp.lt.s32.totalorder %s2896_s9, %s2890_s28 }
  0x47   : > { %899 = vrot.lane.b32.xlu0 %v3116_v5, %s2963_s30  ;;  %895 = vrot.lane.b32.xlu1 %v3108_v3, %s2963_s30  ;;  %p2893_p13 = pneg %p2892_p12 }
  0x48   : > { %2543 = vmatmul.mubr.msk.bf16.gmra.mrb[4].mxu1 %vm318_vm0, %v3153_v11  ;;  %p2899_p0 = por %p2898_p10, %p2897_p8 }
  0x49   : > { %1025 = vmatprep.mubr.bf16.mxu1 %v2961_v0 }
  0x4a   : > { %p2900_p2 = pnand %p2899_p0, %p2893_p13 }
  0x4b   : > { %285 = vrot.lane.b32.xlu0 %v3131_v8, %s2962_s22  ;;  %287 = vrot.lane.b32.xlu1 %v2831_v7, %s2962_s22 }
  0x4f   : > { %905 = vrot.lane.b32.xlu0 %v2833_v6, %s2963_s30  ;;  %907 = vrot.lane.b32.xlu1 %v3146_v10, %s2963_s30 }
  0x53   : > { %903 = vrot.lane.b32.xlu0 %v2831_v7, %s2963_s30  ;;  %289 = vrot.lane.b32.xlu1 %v2833_v6, %s2962_s22 }
  0x57   : > { %291 = vrot.lane.b32.xlu0 %v3146_v10, %s2962_s22  ;;  %1404 = vrot.lane.b32.xlu1 %v3162_v12, %s2962_s22 }
  0x5b   : > { %1406 = vrot.lane.b32.xlu0 %v3168_v13, %s2962_s22  ;;  %1402 = vrot.lane.b32.xlu1 %v3173_v14, %s2962_s22 }
  0x5f   : > { %293 = vrot.lane.b32.xlu0 %v3178_v15, %s2962_s22  ;;  %295 = vrot.lane.b32.xlu1 %v2842_v16, %s2962_s22 }
  0x63   : > { %1408 = vrot.lane.b32.xlu0 %v3186_v17, %s2962_s22  ;;  %1410 = vrot.lane.b32.xlu1 %v3190_v18, %s2962_s22 }
  0x67   : > { %1412 = vrot.lane.b32.xlu0 %v3195_v19, %s2962_s22  ;;  %1414 = vrot.lane.b32.xlu1 %v3200_v20, %s2962_s22 }
  0x6b   : > { %1420 = vrot.lane.b32.xlu0 %v3205_v21, %s2962_s22  ;;  %1422 = vrot.lane.b32.xlu1 %v2851_v22, %s2962_s22 }
  0x6f   : > { %1418 = vrot.lane.b32.xlu0 %v3213_v23, %s2962_s22  ;;  %893 = vrot.lane.b32.xlu1 %v3100_v1, %s2963_s30 }
  0x73   : > { %891 = vrot.lane.b32.xlu0 %v3103_v2, %s2963_s30  ;;  %901 = vrot.lane.b32.xlu1 %v3131_v8, %s2963_s30 }
  0x77   : > { %909 = vrot.lane.b32.xlu0 %v3178_v15, %s2963_s30  ;;  %911 = vrot.lane.b32.xlu1 %v2842_v16, %s2963_s30 }
  0x7b   : > { %1986 = vrot.lane.b32.xlu0 %v3162_v12, %s2963_s30  ;;  %1988 = vrot.lane.b32.xlu1 %v3168_v13, %s2963_s30 }
  0x7f   : > { %1984 = vrot.lane.b32.xlu0 %v3173_v14, %s2963_s30  ;;  %1416 = vrot.lane.b32.xlu1 %v3232_v24, %s2962_s22 }
  0x83   : > { %1990 = vrot.lane.b32.xlu0 %v3186_v17, %s2963_s30  ;;  %1992 = vrot.lane.b32.xlu1 %v3190_v18, %s2963_s30 }
  0x87   : > { %1994 = vrot.lane.b32.xlu0 %v3195_v19, %s2963_s30  ;;  %1996 = vrot.lane.b32.xlu1 %v3200_v20, %s2963_s30 }
  0x8b   : > { %1998 = vrot.lane.b32.xlu0 %v3232_v24, %s2963_s30  ;;  %2000 = vrot.lane.b32.xlu1 %v3213_v23, %s2963_s30 }
  0x8f   : > { %2002 = vrot.lane.b32.xlu0 %v3205_v21, %s2963_s30  ;;  %2004 = vrot.lane.b32.xlu1 %v2851_v22, %s2963_s30 }
  0x93   : > { %1247 = vperm.xlu0 %2820, %v190_v37   ;;  %1252 = vperm.xlu1 %2821, %v191_v46  }
  0x97   : > { %1257 = vperm.xlu1 %2821, %v192_v49   ;;  %1262 = vperm.xlu0 %2820, %v193_v56  }
  0xad   : > { %v278_v25 = vpop.permute.xlu0 %277  ;;  %v276_v26 = vpop.permute.xlu1 %275 }
  0xae   : > { %v298_v30 = vsel %vm297_vm1, %v276_v26, %v278_v25 }
  0xb1   : > { %v280_v27 = vpop.permute.xlu0 %279  ;;  %v282_v28 = vpop.permute.xlu1 %281 }
  0xb2   : > { %v299_v29 = vsel %vm297_vm1, %v278_v25, %v280_v27  ;;  %v300_v35 = vsel %vm297_vm1, %v280_v27, %v282_v28 }
  0xb3   : > { %325 = vmatprep.subr.bf16.mxu0 %v299_v29 }
  0xb4   : > { %326 = vmatpush1.bf16.msra.mxu0 %v298_v30 }
  0xb5   : > { %v284_v32 = vpop.permute.xlu0 %283  ;;  %v898_v33 = vpop.permute.xlu1 %897 }
  0xb6   : > { %v301_v34 = vsel %vm297_vm1, %v282_v28, %v284_v32 }
  0xb7   : > { %2524 = vmatmul.mubr.msk.bf16.vlgmr.msra.gmra.mrb[0].mxu0 %vm318_vm0, %v3258_v31  ;;  %378 = vmatprep.subr.bf16.mxu0 %v301_v34 }
  0xb8   : > { %379 = vmatpush1.bf16.msra.mxu0 %v300_v35  ;;  %367 = vmatprep.mubr.bf16.mxu0 %v2961_v0 }
  0xb9   : > { %v3265_v36 = vpop.permute.xlu0 %899  ;;  %v3270_v38 = vpop.permute.xlu1 %895 }
  0xba   : > { %v917_v39 = vsel %vm913_vm2, %v898_v33, %v3265_v36  ;;  %v916_v40 = vsel %vm913_vm2, %v3270_v38, %v898_v33 }
  0xbb   : > { %993 = vmatprep.subr.bf16.mxu1 %v917_v39 }
  0xbc   : > { %994 = vmatpush1.bf16.msra.mxu1 %v916_v40 }
  0xbd   : > { %v286_v43 = vpop.permute.xlu0 %285  ;;  %v288_v44 = vpop.permute.xlu1 %287 }
  0xbe   : > { %v303_v45 = vsel %vm297_vm1, %v286_v43, %v288_v44  ;;  %v302_v55 = vsel %vm297_vm1, %v284_v32, %v286_v43 }
  0xbf   : > { %2525 = vmatmul.mubr.msk.bf16.gmra.mrb[4].mxu0 %vm318_vm0, %v3279_v41  ;;  %2550 = vmatmul.mubr.msk.bf16.vlgmr.msra.gmra.mrb[8].mxu1 %vm318_vm0, %v3284_v42 }
  0xc0   : > { %431 = vmatprep.subr.bf16.mxu0 %v303_v45  ;;  %410 = vmatprep.mubr.bf16.mxu0 %v2961_v0 }
  0xc1   : > { %v906_v47 = vpop.permute.xlu0 %905  ;;  %1035 = vmatprep.mubr.bf16.mxu1 %v2961_v0  ;;  %v3296_v48 = vpop.permute.xlu1 %907 }
  0xc2   : > { %v921_v51 = vsel %vm913_vm2, %v906_v47, %v3296_v48 }
  0xc3   : > { %1099 = vmatprep.subr.bf16.mxu1 %v921_v51 }
  0xc5   : > { %v3308_v52 = vpop.permute.xlu0 %903  ;;  %v290_v54 = vpop.permute.xlu1 %289 }
  0xc6   : > { %v920_v53 = vsel %vm913_vm2, %v3308_v52, %v906_v47  ;;  %v304_v25 = vsel %vm297_vm1, %v288_v44, %v290_v54 }
  0xc7   : > { %2526 = vmatmul.mubr.msk.bf16.vlgmr.msra.gmra.mrb[8].mxu0 %vm318_vm0, %v3258_v31  ;;  %2551 = vmatmul.mubr.msk.bf16.gmra.mrb[12].mxu1 %vm318_vm0, %v3304_v50 }
  0xc8   : > { %432 = vmatpush1.bf16.msra.mxu0 %v302_v55  ;;  %1100 = vmatpush1.bf16.msra.mxu1 %v920_v53 }
  0xc9   : > { %v292_v57 = vpop.permute.xlu0 %291  ;;  %420 = vmatprep.mubr.bf16.mxu0 %v2961_v0  ;;  %1131 = vmatprep.mubr.bf16.mxu1 %v2961_v0  ;;  %v1405_v58 = vpop.permute.xlu1 %1404 }
  0xca   : > { %v305_v59 = vsel %vm297_vm1, %v290_v54, %v292_v57 }
  0xcb   : > { %484 = vmatprep.subr.bf16.mxu0 %v305_v59 }
  0xcd   : > { %v1407_v60 = vpop.permute.xlu0 %1406  ;;  %v1403_v61 = vpop.permute.xlu1 %1402 }
  0xce   : > { %v1425_v62 = vsel %vm297_vm1, %v1405_v58, %v1407_v60  ;;  %v1424_v63 = vsel %vm297_vm1, %v1403_v61, %v1405_v58 }
  0xcf   : > { %2527 = vmatmul.mubr.msk.bf16.gmra.mrb[12].mxu0 %vm318_vm0, %v3279_v41  ;;  %2554 = vmatmul.mubr.msk.bf16.vlgmr.msra.gmra.mrb[0].mxu1 %vm318_vm0, %v3284_v42 }
  0xd0   : > { %463 = vmatprep.mubr.bf16.mxu0 %v2961_v0  ;;  %1141 = vmatprep.mubr.bf16.mxu1 %v2961_v0 }
  0xd1   : > { %v294_v6 = vpop.permute.xlu0 %293  ;;  %1444 = vmatprep.subr.bf16.mxu1 %v1425_v62  ;;  %v296_v7 = vpop.permute.xlu1 %295 }
  0xd2   : > { %1445 = vmatpush1.bf16.msra.mxu1 %v1424_v63  ;;  %v307_v27 = vsel %vm297_vm1, %v294_v6, %v296_v7  ;;  %v306_v33 = vsel %vm297_vm1, %v292_v57, %v294_v6 }
  0xd5   : > { %v1409_v16 = vpop.permute.xlu0 %1408  ;;  %v1411_v22 = vpop.permute.xlu1 %1410 }
  0xd6   : > { %v1427_v26 = vsel %vm297_vm1, %v1409_v16, %v1411_v22  ;;  %v1426_v28 = vsel %vm297_vm1, %v1407_v60, %v1409_v16 }
  0xd7   : > { %2528 = vmatmul.mubr.msk.bf16.vlgmr.msra.gmra.mrb[16].mxu0 %vm318_vm0, %v3258_v31  ;;  %2555 = vmatmul.mubr.msk.bf16.gmra.mrb[4].mxu1 %vm318_vm0, %v3304_v50 }
  0xd8   : > { %485 = vmatpush1.bf16.msra.mxu0 %v304_v25  ;;  %473 = vmatprep.mubr.bf16.mxu0 %v2961_v0 }
  0xd9   : > { %1476 = vmatprep.mubr.bf16.mxu1 %v2961_v0  ;;  %1497 = vmatprep.subr.bf16.mxu1 %v1427_v26  ;;  %v1413_v29 = vpop.permute.xlu0 %1412  ;;  %v3341_v30 = vpop.permute.xlu1 %1414 }
  0xda   : > { %537 = vmatprep.subr.bf16.mxu0 %v307_v27  ;;  %v1429_v32 = vsel %vm297_vm1, %v1413_v29, %v3341_v30  ;;  %v1428_v34 = vsel %vm297_vm1, %v1411_v22, %v1413_v29 }
  0xdd   : > { %v1421_v35 = vpop.permute.xlu0 %1420  ;;  %v1423_v37 = vpop.permute.xlu1 %1422 }
  0xde   : > { %v1433_v39 = vsel %vm297_vm1, %v1421_v35, %v1423_v37 }
  0xdf   : > { %2529 = vmatmul.mubr.msk.bf16.gmra.mrb[20].mxu0 %vm318_vm0, %v3279_v41  ;;  %2569 = vmatmul.mubr.msk.bf16.vlgmr.msra.gmra.mrb[16].mxu1 %vm318_vm0, %v3258_v31 }
  0xe0   : > { %1498 = vmatpush1.bf16.msra.mxu1 %v1426_v28  ;;  %516 = vmatprep.mubr.bf16.mxu0 %v2961_v0 }
  0xe1   : > { %1486 = vmatprep.mubr.bf16.mxu1 %v2961_v0  ;;  %1550 = vmatprep.subr.bf16.mxu1 %v1429_v32 }
  0xe7   : > { %2530 = vmatmul.mubr.msk.bf16.vlgmr.msra.gmra.mrb[24].mxu0 %vm318_vm0, %v3258_v31  ;;  %2570 = vmatmul.mubr.msk.bf16.gmra.mrb[20].mxu1 %vm318_vm0, %v3279_v41 }
  0xe8   : > { %538 = vmatpush1.bf16.msra.mxu0 %v306_v33  ;;  %526 = vmatprep.mubr.bf16.mxu0 %v2961_v0 }
  0xe9   : > { %1529 = vmatprep.mubr.bf16.mxu1 %v2961_v0  ;;  %616 = vmatprep.subr.bf16.mxu0 %v3100_v1  ;;  %v3375_v1 = vpop.permute.xlu0 %1418 }
  0xea   : > { %v1432_v40 = vsel %vm297_vm1, %v3375_v1, %v1421_v35 }
  0xef   : > { %2531 = vmatmul.mubr.msk.bf16.gmra.mrb[28].mxu0 %vm318_vm0, %v3279_v41  ;;  %2571 = vmatmul.mubr.msk.bf16.vlgmr.msra.gmra.mrb[24].mxu1 %vm318_vm0, %v3258_v31 }
  0xf0   : > { %1551 = vmatpush1.bf16.msra.mxu1 %v1428_v34  ;;  %569 = vmatprep.mubr.bf16.mxu0 %v2961_v0 }
  0xf1   : > { %1539 = vmatprep.mubr.bf16.mxu1 %v2961_v0  ;;  %1656 = vmatprep.subr.bf16.mxu1 %v1433_v39 }
  0xf7   : > { %2532 = vmatmul.mubr.msk.bf16.vlgmr.msra.gmra.mrb[32].mxu0 %vm318_vm0, %v3258_v31  ;;  %2572 = vmatmul.mubr.msk.bf16.gmra.mrb[28].mxu1 %vm318_vm0, %v3279_v41 }
  0xf8   : > { %617 = vmatpush1.bf16.msra.mxu0 %v3103_v2  ;;  %579 = vmatprep.mubr.bf16.mxu0 %v2961_v0  ;;  %v894_v2 = vpop.permute.xlu1 %893 }
  0xf9   : > { %1582 = vmatprep.mubr.bf16.mxu1 %v2961_v0  ;;  %669 = vmatprep.subr.bf16.mxu0 %v3113_v4  ;;  %v892_v4 = vpop.permute.xlu0 %891 }
  0xff   : > { %2533 = vmatmul.mubr.msk.bf16.gmra.mrb[36].mxu0 %vm318_vm0, %v3279_v41  ;;  %2573 = vmatmul.mubr.msk.bf16.vlgmr.msra.gmra.mrb[32].mxu1 %vm318_vm0, %v3258_v31 }
 0x100   : > { %648 = vmatprep.mubr.bf16.mxu0 %v2961_v0  ;;  %1592 = vmatprep.mubr.bf16.mxu1 %v2961_v0 }
 0x101   : > { %1657 = vmatpush1.bf16.msra.mxu1 %v1432_v40 }
 0x102   : > { %1719 = vmatprep.subr.bf16.mxu1 %v3162_v12 }
 0x107   : > { %2536 = vmatmul.mubr.msk.bf16.vlgmr.msra.gmra.mrb[0].mxu0 %vm318_vm0, %v3138_v9  ;;  %2574 = vmatmul.mubr.msk.bf16.gmra.mrb[36].mxu1 %vm318_vm0, %v3279_v41 }
 0x108   : > { %670 = vmatpush1.bf16.msra.mxu0 %v3108_v3  ;;  %658 = vmatprep.mubr.bf16.mxu0 %v2961_v0  ;;  %v915_v3 = vsel %vm913_vm2, %v894_v2, %v3270_v38 }
 0x109   : > { %1688 = vmatprep.mubr.bf16.mxu1 %v2961_v0  ;;  %722 = vmatprep.subr.bf16.mxu0 %v3131_v8  ;;  %v914_v8 = vsel %vm913_vm2, %v892_v4, %v894_v2 }
 0x10f   : > { %2537 = vmatmul.mubr.msk.bf16.gmra.mrb[4].mxu0 %vm318_vm0, %v3153_v11  ;;  %2577 = vmatmul.mubr.msk.bf16.vlgmr.msra.gmra.mrb[40].mxu1 %vm318_vm0, %v3258_v31 }
 0x110   : > { %701 = vmatprep.mubr.bf16.mxu0 %v2961_v0  ;;  %1698 = vmatprep.mubr.bf16.mxu1 %v2961_v0 }
 0x111   : > { %1720 = vmatpush1.bf16.msra.mxu1 %v3173_v14 }
 0x112   : > { %1772 = vmatprep.subr.bf16.mxu1 %v3186_v17 }
 0x117   : > { %2538 = vmatmul.mubr.msk.bf16.vlgmr.msra.gmra.mrb[8].mxu0 %vm318_vm0, %v3138_v9  ;;  %2578 = vmatmul.mubr.msk.bf16.gmra.mrb[44].mxu1 %vm318_vm0, %v3279_v41 }
 0x118   : > { %723 = vmatpush1.bf16.msra.mxu0 %v3116_v5  ;;  %711 = vmatprep.mubr.bf16.mxu0 %v2961_v0  ;;  %v902_v5 = vpop.permute.xlu1 %901 }
 0x119   : > { %1751 = vmatprep.mubr.bf16.mxu1 %v2961_v0  ;;  %828 = vmatprep.subr.bf16.mxu0 %v3178_v15  ;;  %v919_v12 = vsel %vm913_vm2, %v902_v5, %v3308_v52 }
 0x11f   : > { %2539 = vmatmul.mubr.msk.bf16.gmra.mrb[12].mxu0 %vm318_vm0, %v3153_v11  ;;  %2579 = vmatmul.mubr.msk.bf16.vlgmr.msra.gmra.mrb[16].mxu1 %vm318_vm0, %v3138_v9 }
 0x120   : > { %754 = vmatprep.mubr.bf16.mxu0 %v2961_v0  ;;  %1761 = vmatprep.mubr.bf16.mxu1 %v2961_v0 }
 0x121   : > { %1773 = vmatpush1.bf16.msra.mxu1 %v3168_v13  ;;  %v910_v13 = vpop.permute.xlu0 %909 }
 0x122   : > { %1825 = vmatprep.subr.bf16.mxu1 %v3195_v19  ;;  %v918_v19 = vsel %vm913_vm2, %v3265_v36, %v902_v5  ;;  %v922_v45 = vsel %vm913_vm2, %v3296_v48, %v910_v13 }
 0x125   : > { %v1987_v15 = vpop.permute.xlu0 %1986 }
 0x127   : > { %2540 = vmatmul.mubr.msk.bf16.vlgmr.msra.gmra.mrb[16].mxu0 %vm318_vm0, %v3138_v9  ;;  %2580 = vmatmul.mubr.msk.bf16.gmra.mrb[20].mxu1 %vm318_vm0, %v3153_v11 }
 0x128   : > { %829 = vmatpush1.bf16.msra.mxu0 %v3146_v10  ;;  %764 = vmatprep.mubr.bf16.mxu0 %v2961_v0  ;;  %v912_v10 = vpop.permute.xlu1 %911 }
 0x129   : > { %940 = vmatprep.subr.bf16.mxu0 %v915_v3  ;;  %1804 = vmatprep.mubr.bf16.mxu1 %v2961_v0  ;;  %v1985_v38 = vpop.permute.xlu0 %1984 }
 0x12a   : > { %v2006_v44 = vsel %vm913_vm2, %v1985_v38, %v1987_v15 }
 0x12c   : > { %v1989_v14 = vpop.permute.xlu1 %1988 }
 0x12d   : > { %v2007_v17 = vsel %vm913_vm2, %v1987_v15, %v1989_v14 }
 0x12f   : > { %2541 = vmatmul.mubr.msk.bf16.gmra.mrb[20].mxu0 %vm318_vm0, %v3153_v11  ;;  %2581 = vmatmul.mubr.msk.bf16.vlgmr.msra.gmra.mrb[24].mxu1 %vm318_vm0, %v3138_v9 }
 0x130   : > { %860 = vmatprep.mubr.bf16.mxu0 %v2961_v0  ;;  %1814 = vmatprep.mubr.bf16.mxu1 %v2961_v0 }
 0x131   : > { %1826 = vmatpush1.bf16.msra.mxu1 %v3190_v18  ;;  %v923_v18 = vsel %vm913_vm2, %v910_v13, %v912_v10 }
 0x132   : > { %1931 = vmatprep.subr.bf16.mxu1 %v3205_v21  ;;  %v1417_v21 = vpop.permute.xlu1 %1416 }
 0x133   : > { %v1431_v46 = vsel %vm297_vm1, %v1417_v21, %v3375_v1  ;;  %v1430_v53 = vsel %vm297_vm1, %v3341_v30, %v1417_v21 }
 0x136   : > { %v1993_v43 = vpop.permute.xlu1 %1992 }
 0x137   : > { %2544 = vmatmul.mubr.msk.bf16.vlgmr.msra.gmra.mrb[32].mxu0 %vm318_vm0, %v3138_v9  ;;  %2582 = vmatmul.mubr.msk.bf16.gmra.mrb[28].mxu1 %vm318_vm0, %v3153_v11 }
 0x138   : > { %941 = vmatpush1.bf16.msra.mxu0 %v914_v8  ;;  %870 = vmatprep.mubr.bf16.mxu0 %v2961_v0 }
 0x139   : > { %1046 = vmatprep.subr.bf16.mxu0 %v919_v12  ;;  %1857 = vmatprep.mubr.bf16.mxu1 %v2961_v0 }
 0x13a   : > { %v1997_v49 = vpop.permute.xlu1 %1996 }
 0x13e   : > { %v2001_v52 = vpop.permute.xlu1 %2000 }
 0x13f   : > { %2545 = vmatmul.mubr.msk.bf16.gmra.mrb[36].mxu0 %vm318_vm0, %v3153_v11  ;;  %2583 = vmatmul.mubr.msk.bf16.vlgmr.msra.gmra.mrb[32].mxu1 %vm318_vm0, %v3138_v9 }
 0x140   : > { %972 = vmatprep.mubr.bf16.mxu0 %v2961_v0  ;;  %1867 = vmatprep.mubr.bf16.mxu1 %v2961_v0 }
 0x141   : > { %1932 = vmatpush1.bf16.msra.mxu1 %v3213_v23  ;;  %v1991_v23 = vpop.permute.xlu0 %1990 }
 0x142   : > { %2026 = vmatprep.subr.bf16.mxu1 %v2007_v17  ;;  %v2009_v36 = vsel %vm913_vm2, %v1991_v23, %v1993_v43  ;;  %v2008_v51 = vsel %vm913_vm2, %v1989_v14, %v1991_v23  ;;  %v2005_v56 = vpop.permute.xlu1 %2004 }
 0x145   : > { %v1995_v47 = vpop.permute.xlu0 %1994 }
 0x146   : > { %v2011_v48 = vsel %vm913_vm2, %v1995_v47, %v1997_v49  ;;  %v2010_v57 = vsel %vm913_vm2, %v1993_v43, %v1995_v47  ;;  %v3552_v34 = vpop.permute.xlu1 %1252 }
 0x147   : > { %2548 = vmatmul.mubr.msk.bf16.vlgmr.msra.gmra.mrb[0].mxu0 %vm318_vm0, %v3284_v42  ;;  %2584 = vmatmul.mubr.msk.bf16.gmra.mrb[36].mxu1 %vm318_vm0, %v3153_v11 }
 0x148   : > { %1047 = vmatpush1.bf16.msra.mxu0 %v918_v19  ;;  %982 = vmatprep.mubr.bf16.mxu0 %v2961_v0 }
 0x149   : > { %1963 = vmatprep.mubr.bf16.mxu1 %v2961_v0  ;;  %1152 = vmatprep.subr.bf16.mxu0 %v923_v18  ;;  %v1999_v54 = vpop.permute.xlu0 %1998 }
 0x14a   : > { %v3564_v4 = vpop.permute.xlu1 %1257 }
 0x14d   : > { %v2003_v55 = vpop.permute.xlu0 %2002 }
 0x14e   : > { %v2015_v58 = vsel %vm913_vm2, %v2003_v55, %v2005_v56  ;;  %v2014_v59 = vsel %vm913_vm2, %v2001_v52, %v2003_v55 }
 0x14f   : > { %2549 = vmatmul.mubr.msk.bf16.gmra.mrb[4].mxu0 %vm318_vm0, %v3304_v50  ;;  %2587 = vmatmul.mubr.msk.bf16.vlgmr.msra.gmra.mrb[40].mxu1 %vm318_vm0, %v3138_v9 }
 0x150   : > { %1078 = vmatprep.mubr.bf16.mxu0 %v2961_v0  ;;  %1973 = vmatprep.mubr.bf16.mxu1 %v2961_v0 }
 0x151   : > { %2027 = vmatpush1.bf16.msra.mxu1 %v2006_v44  ;;  %v3550_v28 = vpop.permute.xlu0 %1247 }
 0x152   : > { %2079 = vmatprep.subr.bf16.mxu1 %v2009_v36 }
 0x155   : > { %v3566_v13 = vpop.permute.xlu0 %1262 }
 0x157   : > { %2552 = vmatmul.mubr.msk.bf16.vlgmr.msra.gmra.mrb[16].mxu0 %vm318_vm0, %v3284_v42  ;;  %2588 = vmatmul.mubr.msk.bf16.gmra.mrb[44].mxu1 %vm318_vm0, %v3153_v11 }
 0x158   : > { %1153 = vmatpush1.bf16.msra.mxu0 %v922_v45  ;;  %1088 = vmatprep.mubr.bf16.mxu0 %v2961_v0 }
 0x159   : > { %1603 = vmatprep.subr.bf16.mxu0 %v1431_v46  ;;  %2058 = vmatprep.mubr.bf16.mxu1 %v2961_v0 }
 0x15f   : > { %2553 = vmatmul.mubr.msk.bf16.gmra.mrb[20].mxu0 %vm318_vm0, %v3304_v50  ;;  %2589 = vmatmul.mubr.msk.bf16.vlgmr.msra.gmra.mrb[16].mxu1 %vm318_vm0, %v3284_v42 }
 0x160   : > { %2080 = vmatpush1.bf16.msra.mxu1 %v2008_v51  ;;  %1184 = vmatprep.mubr.bf16.mxu0 %v2961_v0 }
 0x161   : > { %2068 = vmatprep.mubr.bf16.mxu1 %v2961_v0  ;;  %2132 = vmatprep.subr.bf16.mxu1 %v2011_v48 }
 0x167   : > { %2556 = vmatmul.mubr.msk.bf16.vlgmr.msra.gmra.mrb[32].mxu0 %vm318_vm0, %v3284_v42  ;;  %2590 = vmatmul.mubr.msk.bf16.gmra.mrb[20].mxu1 %vm318_vm0, %v3304_v50 }
 0x168   : > { %1604 = vmatpush1.bf16.msra.mxu0 %v1430_v53  ;;  %1194 = vmatprep.mubr.bf16.mxu0 %v2961_v0 }
 0x169   : > { %2111 = vmatprep.mubr.bf16.mxu1 %v2961_v0  ;;  %1878 = vmatprep.subr.bf16.mxu0 %v3232_v24  ;;  %v2013_v24 = vsel %vm913_vm2, %v1999_v54, %v2001_v52 }
 0x16f   : > { %2557 = vmatmul.mubr.msk.bf16.gmra.mrb[36].mxu0 %vm318_vm0, %v3304_v50  ;;  %2591 = vmatmul.mubr.msk.bf16.vlgmr.msra.gmra.mrb[24].mxu1 %vm318_vm0, %v3284_v42 }
 0x170   : > { %2133 = vmatpush1.bf16.msra.mxu1 %v2010_v57  ;;  %1635 = vmatprep.mubr.bf16.mxu0 %v2961_v0 }
 0x171   : > { %2121 = vmatprep.mubr.bf16.mxu1 %v2961_v0  ;;  %2238 = vmatprep.subr.bf16.mxu1 %v2015_v58 }
 0x177   : > { %2575 = vmatmul.mubr.msk.bf16.vlgmr.msra.gmra.mrb[40].mxu0 %vm318_vm0, %v3258_v31  ;;  %2592 = vmatmul.mubr.msk.bf16.gmra.mrb[28].mxu1 %vm318_vm0, %v3304_v50 }
 0x178   : > { %1879 = vmatpush1.bf16.msra.mxu0 %v3200_v20  ;;  %1645 = vmatprep.mubr.bf16.mxu0 %v2961_v0  ;;  %v2012_v20 = vsel %vm913_vm2, %v1997_v49, %v1999_v54 }
 0x179   : > { %2164 = vmatprep.mubr.bf16.mxu1 %v2961_v0  ;;  %2185 = vmatprep.subr.bf16.mxu0 %v2013_v24 }
 0x17f   : > { %2576 = vmatmul.mubr.msk.bf16.gmra.mrb[44].mxu0 %vm318_vm0, %v3279_v41  ;;  %2593 = vmatmul.mubr.msk.bf16.vlgmr.msra.gmra.mrb[32].mxu1 %vm318_vm0, %v3284_v42 }
 0x180   : > { %1910 = vmatprep.mubr.bf16.mxu0 %v2961_v0  ;;  %2174 = vmatprep.mubr.bf16.mxu1 %v2961_v0 }
 0x181   : > { %2239 = vmatpush1.bf16.msra.mxu1 %v2014_v59 }
 0x187   : > { %2585 = vmatmul.mubr.msk.bf16.vlgmr.msra.gmra.mrb[40].mxu0 %vm318_vm0, %v3138_v9  ;;  %2594 = vmatmul.mubr.msk.bf16.gmra.mrb[36].mxu1 %vm318_vm0, %v3304_v50 }
 0x188   : > { %2186 = vmatpush1.bf16.msra.mxu0 %v2012_v20  ;;  %1920 = vmatprep.mubr.bf16.mxu0 %v2961_v0 }
 0x189   : > { %2270 = vmatprep.mubr.bf16.mxu1 %v2961_v0 }
 0x18f   : > { %2586 = vmatmul.mubr.msk.bf16.gmra.mrb[44].mxu0 %vm318_vm0, %v3153_v11  ;;  %2597 = vmatmul.mubr.msk.bf16.vlgmr.msra.gmra.mrb[40].mxu1 %vm318_vm0, %v3284_v42 }
 0x190   : > { %2217 = vmatprep.mubr.bf16.mxu0 %v2961_v0  ;;  %2280 = vmatprep.mubr.bf16.mxu1 %v2961_v0 }
 0x192   : > { %v1027_v31 = vpop.f32.mrb[8].mxu1 }
 0x193   : > { %v1029_v9 = vpop.f32.mrb[9].mxu1 }
 0x194   : > { %v1031_v41 = vpop.f32.mrb[10].mxu1 }
 0x195   : > { %v3532_v60 = vpop.f32.mrb[11].mxu1 }
 0x197   : > { %2595 = vmatmul.mubr.msk.bf16.vlgmr.msra.gmra.mrb[40].mxu0 %vm318_vm0, %v3284_v42  ;;  %2598 = vmatmul.mubr.msk.bf16.gmra.mrb[44].mxu1 %vm318_vm0, %v3304_v50 }
 0x198   : > { %2227 = vmatprep.mubr.bf16.mxu0 %v2961_v0 }
 0x19a   : > { %v3539_v11 = vpop.f32.mrb[12].mxu1 }
 0x19b   : > { %v3541_v61 = vpop.f32.mrb[13].mxu1 }
 0x19c   : > { %v3543_v62 = vpop.f32.mrb[14].mxu1 }
 0x19d   : > { %v3545_v63 = vpop.f32.mrb[15].mxu1 }
 0x19f   : > { %2596 = vmatmul.mubr.msk.bf16.gmra.mrb[44].mxu0 %vm318_vm0, %v3304_v50 }
 0x1a2   : > { %v1133_v6 = vpop.f32.mrb[0].mxu1 }
 0x1a3   : > { %v1135_v7 = vpop.f32.mrb[1].mxu1 }
 0x1a4   : > { %v1137_v42 = vpop.f32.mrb[2].mxu1 }
 0x1a5   : > { %v1139_v16 = vpop.f32.mrb[3].mxu1 }
 0x1aa   : > { %v1143_v22 = vpop.f32.mrb[4].mxu1 }
 0x1ab   : > { %v1145_v25 = vpop.f32.mrb[5].mxu1 }
 0x1ac   : > { %v1147_v26 = vpop.f32.mrb[6].mxu1 }
 0x1ad   : > { %v1149_v27 = vpop.f32.mrb[7].mxu1 }
 0x1ba   : > { %v518_v0 = vpop.f32.mrb[24].mxu0 }
 0x1bb   : > { %v2610_v29 = vadd.f32 %v1133_v6, %v518_v0  ;;  %v520_v30 = vpop.f32.mrb[25].mxu0 }
 0x1bc   : > { %v2611_v32 = vadd.f32 %v1135_v7, %v520_v30  ;;  %v522_v33 = vpop.f32.mrb[26].mxu0 }
 0x1bd   : > { %v2612_v35 = vadd.f32 %v1137_v42, %v522_v33  ;;  %v1271_v50 = vadd.f32 %v2610_v29, %v3550_v28  ;;  %v524_v37 = vpop.f32.mrb[27].mxu0 }
 0x1be   : > { %v1272_v39 = vadd.f32 %v2611_v32, %v3550_v28  ;;  %v2613_v1 = vadd.f32 %v1139_v16, %v524_v37 }
 0x1bf   : > { %1311 = vst [vmem:[%s3556_s17 + $0x30] sm:$0xff] %v1271_v50  ;;  %v1281_v40 = vadd.f32 %v2612_v35, %v3552_v34 }
 0x1c0   : > { %1312 = vst [vmem:[%s3556_s17 + $0x38] sm:$0xff] %v1272_v39  ;;  %v1282_v2 = vadd.f32 %v2613_v1, %v3552_v34 }
 0x1c1   : > { %1321 = vst [vmem:[%s3556_s17 + $0xd0] sm:$0xff] %v1281_v40 }
 0x1c2   : > { %1322 = vst [vmem:[%s3556_s17 + $0xd8] sm:$0xff] %v1282_v2  ;;  %v528_v3 = vpop.f32.mrb[28].mxu0 }
 0x1c3   : > { %v2614_v5 = vadd.f32 %v1143_v22, %v528_v3  ;;  %v530_v8 = vpop.f32.mrb[29].mxu0 }
 0x1c4   : > { %v2615_v10 = vadd.f32 %v1145_v25, %v530_v8  ;;  %v532_v12 = vpop.f32.mrb[30].mxu0 }
 0x1c5   : > { %v2616_v14 = vadd.f32 %v1147_v26, %v532_v12  ;;  %v1291_v15 = vadd.f32 %v2614_v5, %v3564_v4  ;;  %v534_v17 = vpop.f32.mrb[31].mxu0 }
 0x1c6   : > { %v1292_v18 = vadd.f32 %v2615_v10, %v3564_v4  ;;  %v2617_v19 = vadd.f32 %v1149_v27, %v534_v17 }
 0x1c7   : > { %1331 = vst [vmem:[%s3556_s17 + $0x170] sm:$0xff] %v1291_v15  ;;  %v1301_v21 = vadd.f32 %v2616_v14, %v3566_v13 }
 0x1c8   : > { %1332 = vst [vmem:[%s3556_s17 + $0x178] sm:$0xff] %v1292_v18  ;;  %v1302_v38 = vadd.f32 %v2617_v19, %v3566_v13 }
 0x1c9   : > { %1341 = vst [vmem:[%s3556_s17 + $0x210] sm:$0xff] %v1301_v21 }
 0x1ca   : > { %1342 = vst [vmem:[%s3556_s17 + $0x218] sm:$0xff] %v1302_v38 }
 0x1ea   : > { %v703_v23 = vpop.f32.mrb[8].mxu0 }
 0x1eb   : > { %v2602_v43 = vadd.f32 %v1027_v31, %v703_v23  ;;  %v705_v44 = vpop.f32.mrb[9].mxu0 }
 0x1ec   : > { %v2603_v36 = vadd.f32 %v1029_v9, %v705_v44  ;;  %v707_v45 = vpop.f32.mrb[10].mxu0 }
 0x1ed   : > { %v1267_v46 = vadd.f32 %v2602_v43, %v3550_v28  ;;  %v2604_v47 = vadd.f32 %v1031_v41, %v707_v45  ;;  %v709_v49 = vpop.f32.mrb[11].mxu0 }
 0x1ee   : > { %v1268_v51 = vadd.f32 %v2603_v36, %v3550_v28  ;;  %v2605_v48 = vadd.f32 %v3532_v60, %v709_v49 }
 0x1ef   : > { %1307 = vst [vmem:[%s3556_s17 + $0x10] sm:$0xff] %v1267_v46  ;;  %v1277_v52 = vadd.f32 %v2604_v47, %v3552_v34 }
 0x1f0   : > { %1308 = vst [vmem:[%s3556_s17 + $0x18] sm:$0xff] %v1268_v51  ;;  %v1278_v53 = vadd.f32 %v2605_v48, %v3552_v34 }
 0x1f1   : > { %1317 = vst [vmem:[%s3556_s17 + $0xb0] sm:$0xff] %v1277_v52 }
 0x1f2   : > { %1318 = vst [vmem:[%s3556_s17 + $0xb8] sm:$0xff] %v1278_v53  ;;  %v713_v54 = vpop.f32.mrb[12].mxu0 }
 0x1f3   : > { %v2606_v55 = vadd.f32 %v3539_v11, %v713_v54  ;;  %v715_v56 = vpop.f32.mrb[13].mxu0 }
 0x1f4   : > { %v2607_v57 = vadd.f32 %v3541_v61, %v715_v56  ;;  %v717_v58 = vpop.f32.mrb[14].mxu0 }
 0x1f5   : > { %v1287_v24 = vadd.f32 %v2606_v55, %v3564_v4  ;;  %v2608_v59 = vadd.f32 %v3543_v62, %v717_v58  ;;  %v719_v20 = vpop.f32.mrb[15].mxu0 }
 0x1f6   : > { %v1288_v31 = vadd.f32 %v2607_v57, %v3564_v4  ;;  %v2609_v9 = vadd.f32 %v3545_v63, %v719_v20 }
 0x1f7   : > { %1327 = vst [vmem:[%s3556_s17 + $0x150] sm:$0xff] %v1287_v24  ;;  %v1297_v41 = vadd.f32 %v2608_v59, %v3566_v13 }
 0x1f8   : > { %1328 = vst [vmem:[%s3556_s17 + $0x158] sm:$0xff] %v1288_v31  ;;  %v1298_v60 = vadd.f32 %v2609_v9, %v3566_v13 }
 0x1f9   : > { %1337 = vst [vmem:[%s3556_s17 + $0x1f0] sm:$0xff] %v1297_v41 }
 0x1fa   : > { %1338 = vst [vmem:[%s3556_s17 + $0x1f8] sm:$0xff] %v1298_v60 }
 0x21a   : > { %v974_v11 = vpop.f32.mrb[0].mxu0 }
 0x21b   : > { %v1265_v61 = vadd.f32 %v3550_v28, %v974_v11  ;;  %v976_v62 = vpop.f32.mrb[1].mxu0 }
 0x21c   : > { %v1266_v6 = vadd.f32 %v3550_v28, %v976_v62  ;;  %v978_v7 = vpop.f32.mrb[2].mxu0 }
 0x21d   : > { %1305 = vst [vmem:[%s3556_s17] sm:$0xff] %v1265_v61  ;;  %v1275_v63 = vadd.f32 %v3552_v34, %v978_v7  ;;  %v980_v42 = vpop.f32.mrb[3].mxu0 }
 0x21e   : > { %1306 = vst [vmem:[%s3556_s17 + $0x8] sm:$0xff] %v1266_v6  ;;  %v1276_v16 = vadd.f32 %v3552_v34, %v980_v42 }
 0x21f   : > { %1315 = vst [vmem:[%s3556_s17 + $0xa0] sm:$0xff] %v1275_v63 }
 0x220   : > { %1316 = vst [vmem:[%s3556_s17 + $0xa8] sm:$0xff] %v1276_v16 }
 0x222   : > { %v984_v22 = vpop.f32.mrb[4].mxu0 }
 0x223   : > { %v1285_v25 = vadd.f32 %v3564_v4, %v984_v22  ;;  %v986_v26 = vpop.f32.mrb[5].mxu0 }
 0x224   : > { %v1286_v27 = vadd.f32 %v3564_v4, %v986_v26  ;;  %v988_v0 = vpop.f32.mrb[6].mxu0 }
 0x225   : > { %1325 = vst [vmem:[%s3556_s17 + $0x140] sm:$0xff] %v1285_v25  ;;  %v1295_v29 = vadd.f32 %v3566_v13, %v988_v0  ;;  %v990_v30 = vpop.f32.mrb[7].mxu0 }
 0x226   : > { %1326 = vst [vmem:[%s3556_s17 + $0x148] sm:$0xff] %v1286_v27  ;;  %v1296_v32 = vadd.f32 %v3566_v13, %v990_v30 }
 0x227   : > { %1335 = vst [vmem:[%s3556_s17 + $0x1e0] sm:$0xff] %v1295_v29 }
 0x228   : > { %1336 = vst [vmem:[%s3556_s17 + $0x1e8] sm:$0xff] %v1296_v32 }
 0x22a   : > { %v1080_v33 = vpop.f32.mrb[16].mxu0 }
 0x22b   : > { %v1269_v35 = vadd.f32 %v3550_v28, %v1080_v33  ;;  %v1082_v50 = vpop.f32.mrb[17].mxu0 }
 0x22c   : > { %v1270_v37 = vadd.f32 %v3550_v28, %v1082_v50  ;;  %v1084_v39 = vpop.f32.mrb[18].mxu0 }
 0x22d   : > { %1309 = vst [vmem:[%s3556_s17 + $0x20] sm:$0xff] %v1269_v35  ;;  %v1279_v1 = vadd.f32 %v3552_v34, %v1084_v39  ;;  %v1086_v40 = vpop.f32.mrb[19].mxu0 }
 0x22e   : > { %1310 = vst [vmem:[%s3556_s17 + $0x28] sm:$0xff] %v1270_v37  ;;  %v1280_v2 = vadd.f32 %v3552_v34, %v1086_v40 }
 0x22f   : > { %1319 = vst [vmem:[%s3556_s17 + $0xc0] sm:$0xff] %v1279_v1 }
 0x230   : > { %1320 = vst [vmem:[%s3556_s17 + $0xc8] sm:$0xff] %v1280_v2 }
 0x232   : > { %v1090_v3 = vpop.f32.mrb[20].mxu0  ;;  %v2060_v5 = vpop.f32.mrb[16].mxu1 }
 0x233   : > { %v1289_v8 = vadd.f32 %v3564_v4, %v1090_v3  ;;  %v2331_v10 = vadd.f32 %v2060_v5, %v3550_v28  ;;  %v1092_v12 = vpop.f32.mrb[21].mxu0  ;;  %v2062_v14 = vpop.f32.mrb[17].mxu1 }
 0x234   : > { %v1290_v15 = vadd.f32 %v3564_v4, %v1092_v12  ;;  %v2332_v17 = vadd.f32 %v2062_v14, %v3550_v28  ;;  %v1094_v18 = vpop.f32.mrb[22].mxu0  ;;  %v2064_v19 = vpop.f32.mrb[18].mxu1 }
 0x235   : > { %1329 = vst [vmem:[%s3556_s17 + $0x160] sm:$0xff] %v1289_v8  ;;  %2371 = vst [vmem:[%s3556_s17 + $0x50] sm:$0xff] %v2331_v10  ;;  %v1299_v21 = vadd.f32 %v3566_v13, %v1094_v18  ;;  %v2341_v38 = vadd.f32 %v2064_v19, %v3552_v34  ;;  %v1096_v23 = vpop.f32.mrb[23].mxu0  ;;  %v2066_v43 = vpop.f32.mrb[19].mxu1 }
 0x236   : > { %1330 = vst [vmem:[%s3556_s17 + $0x168] sm:$0xff] %v1290_v15  ;;  %2372 = vst [vmem:[%s3556_s17 + $0x58] sm:$0xff] %v2332_v17  ;;  %v1300_v44 = vadd.f32 %v3566_v13, %v1096_v23  ;;  %v2342_v36 = vadd.f32 %v2066_v43, %v3552_v34 }
 0x237   : > { %1339 = vst [vmem:[%s3556_s17 + $0x200] sm:$0xff] %v1299_v21  ;;  %2381 = vst [vmem:[%s3556_s17 + $0xf0] sm:$0xff] %v2341_v38 }
 0x238   : > { %1340 = vst [vmem:[%s3556_s17 + $0x208] sm:$0xff] %v1300_v44  ;;  %2382 = vst [vmem:[%s3556_s17 + $0xf8] sm:$0xff] %v2342_v36 }
 0x23a   : > { %v1186_v45 = vpop.f32.mrb[32].mxu0  ;;  %v2070_v46 = vpop.f32.mrb[20].mxu1 }
 0x23b   : > { %v1273_v47 = vadd.f32 %v3550_v28, %v1186_v45  ;;  %v2351_v49 = vadd.f32 %v2070_v46, %v3564_v4  ;;  %v1188_v51 = vpop.f32.mrb[33].mxu0  ;;  %v2072_v48 = vpop.f32.mrb[21].mxu1 }
 0x23c   : > { %v1274_v52 = vadd.f32 %v3550_v28, %v1188_v51  ;;  %v2352_v53 = vadd.f32 %v2072_v48, %v3564_v4  ;;  %v1190_v54 = vpop.f32.mrb[34].mxu0  ;;  %v2074_v55 = vpop.f32.mrb[22].mxu1 }
 0x23d   : > { %1313 = vst [vmem:[%s3556_s17 + $0x40] sm:$0xff] %v1273_v47  ;;  %2391 = vst [vmem:[%s3556_s17 + $0x190] sm:$0xff] %v2351_v49  ;;  %v1283_v56 = vadd.f32 %v3552_v34, %v1190_v54  ;;  %v2361_v57 = vadd.f32 %v2074_v55, %v3566_v13  ;;  %v1192_v58 = vpop.f32.mrb[35].mxu0  ;;  %v2076_v24 = vpop.f32.mrb[23].mxu1 }
 0x23e   : > { %1314 = vst [vmem:[%s3556_s17 + $0x48] sm:$0xff] %v1274_v52  ;;  %2392 = vst [vmem:[%s3556_s17 + $0x198] sm:$0xff] %v2352_v53  ;;  %v1284_v59 = vadd.f32 %v3552_v34, %v1192_v58  ;;  %v2362_v20 = vadd.f32 %v2076_v24, %v3566_v13 }
 0x23f   : > { %1323 = vst [vmem:[%s3556_s17 + $0xe0] sm:$0xff] %v1283_v56  ;;  %2401 = vst [vmem:[%s3556_s17 + $0x230] sm:$0xff] %v2361_v57 }
 0x240   : > { %1324 = vst [vmem:[%s3556_s17 + $0xe8] sm:$0xff] %v1284_v59  ;;  %2402 = vst [vmem:[%s3556_s17 + $0x238] sm:$0xff] %v2362_v20 }
 0x242   : > { %v1196_v31 = vpop.f32.mrb[36].mxu0  ;;  %v2113_v9 = vpop.f32.mrb[24].mxu1 }
 0x243   : > { %v1293_v41 = vadd.f32 %v3564_v4, %v1196_v31  ;;  %v2333_v60 = vadd.f32 %v2113_v9, %v3550_v28  ;;  %v1198_v11 = vpop.f32.mrb[37].mxu0  ;;  %v2115_v61 = vpop.f32.mrb[25].mxu1 }
 0x244   : > { %v1294_v62 = vadd.f32 %v3564_v4, %v1198_v11  ;;  %v2334_v6 = vadd.f32 %v2115_v61, %v3550_v28  ;;  %v1200_v7 = vpop.f32.mrb[38].mxu0  ;;  %v2117_v63 = vpop.f32.mrb[26].mxu1 }
 0x245   : > { %1333 = vst [vmem:[%s3556_s17 + $0x180] sm:$0xff] %v1293_v41  ;;  %2373 = vst [vmem:[%s3556_s17 + $0x60] sm:$0xff] %v2333_v60  ;;  %v1303_v42 = vadd.f32 %v3566_v13, %v1200_v7  ;;  %v2343_v16 = vadd.f32 %v2117_v63, %v3552_v34  ;;  %v1202_v22 = vpop.f32.mrb[39].mxu0  ;;  %v2119_v25 = vpop.f32.mrb[27].mxu1 }
 0x246   : > { %1334 = vst [vmem:[%s3556_s17 + $0x188] sm:$0xff] %v1294_v62  ;;  %2374 = vst [vmem:[%s3556_s17 + $0x68] sm:$0xff] %v2334_v6  ;;  %v1304_v26 = vadd.f32 %v3566_v13, %v1202_v22  ;;  %v2344_v27 = vadd.f32 %v2119_v25, %v3552_v34 }
 0x247   : > { %1343 = vst [vmem:[%s3556_s17 + $0x220] sm:$0xff] %v1303_v42  ;;  %2383 = vst [vmem:[%s3556_s17 + $0x100] sm:$0xff] %v2343_v16 }
 0x248   : > { %1344 = vst [vmem:[%s3556_s17 + $0x228] sm:$0xff] %v1304_v26  ;;  %2384 = vst [vmem:[%s3556_s17 + $0x108] sm:$0xff] %v2344_v27 }
 0x24a   : > { %v2123_v0 = vpop.f32.mrb[28].mxu1 }
 0x24b   : > { %v2353_v29 = vadd.f32 %v2123_v0, %v3564_v4  ;;  %v2125_v30 = vpop.f32.mrb[29].mxu1 }
 0x24c   : > { %v2354_v32 = vadd.f32 %v2125_v30, %v3564_v4  ;;  %v2127_v33 = vpop.f32.mrb[30].mxu1 }
 0x24d   : > { %2393 = vst [vmem:[%s3556_s17 + $0x1a0] sm:$0xff] %v2353_v29  ;;  %v2363_v35 = vadd.f32 %v2127_v33, %v3566_v13  ;;  %v2129_v50 = vpop.f32.mrb[31].mxu1 }
 0x24e   : > { %2394 = vst [vmem:[%s3556_s17 + $0x1a8] sm:$0xff] %v2354_v32  ;;  %v2364_v37 = vadd.f32 %v2129_v50, %v3566_v13 }
 0x24f   : > { %2403 = vst [vmem:[%s3556_s17 + $0x240] sm:$0xff] %v2363_v35 }
 0x250   : > { %2404 = vst [vmem:[%s3556_s17 + $0x248] sm:$0xff] %v2364_v37 }
 0x252   : > { %v2166_v39 = vpop.f32.mrb[32].mxu1 }
 0x253   : > { %v2335_v1 = vadd.f32 %v2166_v39, %v3550_v28  ;;  %v2168_v40 = vpop.f32.mrb[33].mxu1 }
 0x254   : > { %v2336_v2 = vadd.f32 %v2168_v40, %v3550_v28  ;;  %v2170_v3 = vpop.f32.mrb[34].mxu1 }
 0x255   : > { %2375 = vst [vmem:[%s3556_s17 + $0x70] sm:$0xff] %v2335_v1  ;;  %v2345_v5 = vadd.f32 %v2170_v3, %v3552_v34  ;;  %v2172_v8 = vpop.f32.mrb[35].mxu1 }
 0x256   : > { %2376 = vst [vmem:[%s3556_s17 + $0x78] sm:$0xff] %v2336_v2  ;;  %v2346_v10 = vadd.f32 %v2172_v8, %v3552_v34 }
 0x257   : > { %2385 = vst [vmem:[%s3556_s17 + $0x110] sm:$0xff] %v2345_v5 }
 0x258   : > { %2386 = vst [vmem:[%s3556_s17 + $0x118] sm:$0xff] %v2346_v10 }
 0x25a   : > { %v2176_v12 = vpop.f32.mrb[36].mxu1 }
 0x25b   : > { %v2355_v14 = vadd.f32 %v2176_v12, %v3564_v4  ;;  %v2178_v15 = vpop.f32.mrb[37].mxu1 }
 0x25c   : > { %v2356_v17 = vadd.f32 %v2178_v15, %v3564_v4  ;;  %v2180_v18 = vpop.f32.mrb[38].mxu1 }
 0x25d   : > { %2395 = vst [vmem:[%s3556_s17 + $0x1b0] sm:$0xff] %v2355_v14  ;;  %v2365_v19 = vadd.f32 %v2180_v18, %v3566_v13  ;;  %v2182_v21 = vpop.f32.mrb[39].mxu1 }
 0x25e   : > { %2396 = vst [vmem:[%s3556_s17 + $0x1b8] sm:$0xff] %v2356_v17  ;;  %v2366_v38 = vadd.f32 %v2182_v21, %v3566_v13 }
 0x25f   : > { %2405 = vst [vmem:[%s3556_s17 + $0x250] sm:$0xff] %v2365_v19 }
 0x260   : > { %2406 = vst [vmem:[%s3556_s17 + $0x258] sm:$0xff] %v2366_v38 }
 0x262   : > { %v2272_v23 = vpop.f32.mrb[40].mxu1 }
 0x263   : > { %v2339_v43 = vadd.f32 %v2272_v23, %v3550_v28  ;;  %v2274_v44 = vpop.f32.mrb[41].mxu1 }
 0x264   : > { %v2340_v36 = vadd.f32 %v2274_v44, %v3550_v28  ;;  %v2276_v45 = vpop.f32.mrb[42].mxu1 }
 0x265   : > { %2379 = vst [vmem:[%s3556_s17 + $0x90] sm:$0xff] %v2339_v43  ;;  %v2349_v46 = vadd.f32 %v2276_v45, %v3552_v34  ;;  %v2278_v47 = vpop.f32.mrb[43].mxu1 }
 0x266   : > { %2380 = vst [vmem:[%s3556_s17 + $0x98] sm:$0xff] %v2340_v36  ;;  %v2350_v49 = vadd.f32 %v2278_v47, %v3552_v34 }
 0x267   : > { %2389 = vst [vmem:[%s3556_s17 + $0x130] sm:$0xff] %v2349_v46 }
 0x268   : > { %2390 = vst [vmem:[%s3556_s17 + $0x138] sm:$0xff] %v2350_v49 }
 0x26a   : > { %v2219_v51 = vpop.f32.mrb[40].mxu0  ;;  %v2282_v48 = vpop.f32.mrb[44].mxu1 }
 0x26b   : > { %v2337_v52 = vadd.f32 %v2219_v51, %v3550_v28  ;;  %v2359_v53 = vadd.f32 %v2282_v48, %v3564_v4  ;;  %v2221_v54 = vpop.f32.mrb[41].mxu0  ;;  %v2284_v55 = vpop.f32.mrb[45].mxu1 }
 0x26c   : > { %v2338_v56 = vadd.f32 %v2221_v54, %v3550_v28  ;;  %v2360_v57 = vadd.f32 %v2284_v55, %v3564_v4  ;;  %v2223_v58 = vpop.f32.mrb[42].mxu0  ;;  %v2286_v24 = vpop.f32.mrb[46].mxu1 }
 0x26d   : > { %2377 = vst [vmem:[%s3556_s17 + $0x80] sm:$0xff] %v2337_v52  ;;  %2399 = vst [vmem:[%s3556_s17 + $0x1d0] sm:$0xff] %v2359_v53  ;;  %v2347_v59 = vadd.f32 %v2223_v58, %v3552_v34  ;;  %v2369_v20 = vadd.f32 %v2286_v24, %v3566_v13  ;;  %v2225_v31 = vpop.f32.mrb[43].mxu0  ;;  %v2288_v9 = vpop.f32.mrb[47].mxu1 }
 0x26e   : > { %2378 = vst [vmem:[%s3556_s17 + $0x88] sm:$0xff] %v2338_v56  ;;  %2400 = vst [vmem:[%s3556_s17 + $0x1d8] sm:$0xff] %v2360_v57  ;;  %v2348_v28 = vadd.f32 %v2225_v31, %v3552_v34  ;;  %v2370_v41 = vadd.f32 %v2288_v9, %v3566_v13 }
 0x26f   : > { %2387 = vst [vmem:[%s3556_s17 + $0x120] sm:$0xff] %v2347_v59  ;;  %2409 = vst [vmem:[%s3556_s17 + $0x270] sm:$0xff] %v2369_v20 }
 0x270   : > { %2388 = vst [vmem:[%s3556_s17 + $0x128] sm:$0xff] %v2348_v28  ;;  %2410 = vst [vmem:[%s3556_s17 + $0x278] sm:$0xff] %v2370_v41 }
 0x272   : > { %v2229_v60 = vpop.f32.mrb[44].mxu0 }
 0x273   : > { %v2357_v11 = vadd.f32 %v2229_v60, %v3564_v4  ;;  %v2231_v61 = vpop.f32.mrb[45].mxu0 }
 0x274   : > { %v2358_v62 = vadd.f32 %v2231_v61, %v3564_v4  ;;  %v2233_v34 = vpop.f32.mrb[46].mxu0 }
 0x275   : > { %2397 = vst [vmem:[%s3556_s17 + $0x1c0] sm:$0xff] %v2357_v11  ;;  %v2367_v6 = vadd.f32 %v2233_v34, %v3566_v13  ;;  %v2235_v7 = vpop.f32.mrb[47].mxu0 }
 0x276   : > { %2398 = vst [vmem:[%s3556_s17 + $0x1c8] sm:$0xff] %v2358_v62  ;;  %v2368_v63 = vadd.f32 %v2235_v7, %v3566_v13 }
 0x277   : > { %2407 = vst [vmem:[%s3556_s17 + $0x260] sm:$0xff] %v2367_v6 }
 0x278   : > { %2408 = vst [vmem:[%s3556_s17 + $0x268] sm:$0xff] %v2368_v63 }
 0x279   : > { %2903 = shalt.err (!%p2900_p2)
}
 0x27a   : > { %s2904_s10 = scalar_lea.hbm %s3726_s27, 10240  ;;  %s2908_s4 = scalar_lea.hbm %s3779_s3, 20480 }
 0x27b   : > { %p2905_p4 = scmp.ne.s32.totalorder %s3726_s27, %s2904_s10  ;;  %p2909_p9 = scmp.lt.u32.totalorder %s3726_s27, %s3779_s3 }
 0x27c   : > { %p2910_p1 = scmp.lt.u32.totalorder %s2908_s4, %s2904_s10  ;;  %p2912_p6 = scmp.lt.u32.totalorder %s2904_s10, %s3726_s27 }
 0x27d   : > { %p2906_p5 = pnand %p2905_p4, %p3785_p11 }
 0x27e   : > { %p2911_p3 = por %p2910_p1, %p2909_p9 }
 0x27f   : > { %p2907_p7 = pneg %p2906_p5 }
 0x280   : > { %p2913_p12 = por %p2912_p6, %p2911_p3 }
 0x282   : > { %p2914_p13 = pnand %p2913_p12, %p2907_p7 }
 0x284   : > { %2917 = shalt.err (!%p2914_p13)
}
 0x285   : > { %s2965_s11 = smov 2560   ;;  %s2966_s17 = smov 160  }
 0x286   : > { %2769 = dma.vmem_to_hbm [thread:$0]  (%p3785_p11), %s3728_s20, 10240, %s3726_s27, %s2412_s16, %s2965_s11, %s2965_s11, %s2966_s17  }
 0x287 PF: > { %s2440_s19 = sand.u32 1, %s2944_s12   ;;  %p3786_p8 = scmp.ne.s32.totalorder %s3783_s24, 0 }
 0x288   : > { %p3787_p10 = scmp.ge.s32.totalorder %s2956_s15, 2  ;;  %s2441_s25 = scalar_lea.sflag [#allocation4], %s2440_s19 }
 0x28a   : > { %p2776_p0 = pnand %p3787_p10, %p3786_p8 }
 0x28c   : > { %2939 = dma.done.wait (!%p2776_p0), %s2441_s25, 10240  }
 0x28d   : > { %2941 = vsyncadd (!%p2776_p0), %s2441_s25, 4294957056  ;;  %p16_p2 = scmp.ge.s32.totalorder %s3012_s18, 4   ;;  %s3788_s12 = smov %s2948_s13 }
 0x28e   : > { %s3789_s13 = smov %s2952_s14  ;;  %s3790_s14 = smov %s3024_s21 }
 0x28f   : > { %s3791_s15 = smov %s3012_s18  ;;  %18 = sbr.rel (!%p16_p2) target bundleno = 5 (0x5), region = 79 }
 0x296   :  { %2446 = vsyncpa [#allocation3], 1 }
 0x297   :  { %2448 = vsyncpa [#allocation3 + $0x1], 1 }
 0x298   :  { %2449 = vsyncpa [#allocation4], 1 }
 0x299   :  { %2451 = vsyncpa [#allocation4 + $0x1], 1 }

</bundles_post_ra>
